<compile_context>
chip_gen: v6e
topology: v6e:2x2x1
jax: 0.10.0
libtpu: 0.0.40
codegen_flags: <defaults>
</compile_context>

<pallas_src>
import functools
import math

import jax
import jax.numpy as jnp
from jax.experimental import pallas as pl
from jax.experimental.pallas import tpu as pltpu


def _round_up(x: int, m: int) -> int:
    return ((x + m - 1) // m) * m


def _sublane_multiple(dtype) -> int:
    """Minimum sublane tile for a dtype (f32: 8, bf16: 16, int8/fp8: 32)."""
    return {4: 8, 2: 16, 1: 32}.get(jnp.dtype(dtype).itemsize, 8)


def _pad_rows(x: jnp.ndarray, rows: int) -> jnp.ndarray:
    r = x.shape[0]
    if r == rows:
        return x
    return jnp.pad(x, ((0, rows - r), (0, 0)))


# ----------------------------------------------------------------------------
# Fully fused MultiHeadAttention forward kernel.
#
#   grid = (2, nb):
#     phase 0 (program_id(0)==0): for each keys/values batch tile, compute
#       K = keys @ Wk, V = values @ Wv and accumulate
#       M += sum_h K[:, h]^T @ V[:, h]          (d_head, d_head) f32 scratch
#     phase 1 (program_id(0)==1): for each queries batch tile, compute
#       Q = queries @ Wq and
#       out = sum_h Q[:, h] @ (scale * M) @ Wo[h, :]
# ----------------------------------------------------------------------------
def _fused_mha_kernel(q_ref, k_ref, v_ref, wq_ref, wk_ref, wv_ref, wo_ref,
                      o_ref, m_ref, *, num_heads, d_head, scale):
    phase = pl.program_id(0)
    tile = pl.program_id(1)

    @pl.when(jnp.logical_and(phase == 0, tile == 0))
    def _init():
        m_ref[...] = jnp.zeros_like(m_ref)

    @pl.when(phase == 0)
    def _kv_phase():
        k = jnp.dot(k_ref[...], wk_ref[...], preferred_element_type=jnp.float32)
        v = jnp.dot(v_ref[...], wv_ref[...], preferred_element_type=jnp.float32)
        m = m_ref[...]
        for h in range(num_heads):                       # static, small
            lo = h * d_head
            hi = lo + d_head
            # (d, d) += K_h^T @ V_h  (contract the batch-tile axis of both)
            m = m + jax.lax.dot_general(
                k[:, lo:hi], v[:, lo:hi],
                dimension_numbers=(((0,), (0,)), ((), ())),
                preferred_element_type=jnp.float32)
        m_ref[...] = m

    @pl.when(phase == 1)
    def _q_phase():
        q = jnp.dot(q_ref[...], wq_ref[...], preferred_element_type=jnp.float32)
        wo = wo_ref[...].astype(jnp.float32)
        m = m_ref[...] * scale           # scale hoisted: one (d,d) multiply
        acc = jnp.zeros(o_ref.shape, jnp.float32)
        for h in range(num_heads):                       # static, small
            lo = h * d_head
            hi = lo + d_head
            mw = jnp.dot(m, wo[lo:hi, :],
                         preferred_element_type=jnp.float32)        # (d, E)
            acc = acc + jnp.dot(q[:, lo:hi], mw,
                                preferred_element_type=jnp.float32)  # (tb, E)
        o_ref[...] = acc.astype(o_ref.dtype)


def multi_head_attention_forward(queries, keys, values,
                                 w_q, w_k, w_v, w_o, num_heads,
                                 *, block_b: int = 512):
    """Eval-mode MultiHeadAttention forward.

    queries/keys/values: (batch, embed). w_*: (embed, embed), applied as x @ W.
    """
    B, E = queries.shape
    assert keys.shape == (B, E) and values.shape == (B, E)
    assert E % num_heads == 0
    d_head = E // num_heads
    scale = 1.0 / math.sqrt(d_head)

    sub = _sublane_multiple(queries.dtype)
    tb = min(_round_up(block_b, sub), _round_up(B, sub))
    Bp = _round_up(B, tb)
    nb = Bp // tb

    # Zero-padded batch rows are exact: padded K/V rows contribute zero to M,
    # padded Q rows produce rows that are sliced off below.
    q_p = _pad_rows(queries, Bp)
    k_p = _pad_rows(keys, Bp)
    v_p = _pad_rows(values, Bp)

    kernel = functools.partial(_fused_mha_kernel, num_heads=num_heads,
                               d_head=d_head, scale=scale)

    itemsize = jnp.dtype(queries.dtype).itemsize
    cost = pl.CostEstimate(
        flops=int(8 * Bp * E * E + 4 * Bp * E * d_head),
        transcendentals=0,
        bytes_accessed=int((4 * Bp * E + 4 * E * E) * itemsize),
    )

    out = pl.pallas_call(
        kernel,
        out_shape=jax.ShapeDtypeStruct((Bp, E), queries.dtype),
        grid=(2, nb),
        in_specs=[
            # queries: only needed in phase 1 (block i); phase 0 pins block 0
            pl.BlockSpec((tb, E), lambda p, i: (i * p, 0)),
            # keys/values: only needed in phase 0 (block i); phase 1 pins block 0
            pl.BlockSpec((tb, E), lambda p, i: (i * (1 - p), 0)),
            pl.BlockSpec((tb, E), lambda p, i: (i * (1 - p), 0)),
            # weights: VMEM-resident across the whole grid
            pl.BlockSpec((E, E), lambda p, i: (0, 0)),
            pl.BlockSpec((E, E), lambda p, i: (0, 0)),
            pl.BlockSpec((E, E), lambda p, i: (0, 0)),
            pl.BlockSpec((E, E), lambda p, i: (0, 0)),
        ],
        out_specs=pl.BlockSpec((tb, E), lambda p, i: (i * p, 0)),
        scratch_shapes=[pltpu.VMEM((d_head, d_head), jnp.float32)],
        compiler_params=pltpu.CompilerParams(
            dimension_semantics=("arbitrary", "arbitrary"),
            vmem_limit_bytes=32 * 1024 * 1024,
        ),
        cost_estimate=cost,
    )(q_p, k_p, v_p, w_q, w_k, w_v, w_o)

    if Bp != B:
        out = out[:B]
    return out


# ----------------------------------------------------------------------------
# Reference (plain JAX) and demo
# ----------------------------------------------------------------------------
def _reference_mha(q_in, k_in, v_in, wq, wk, wv, wo, num_heads):
    B, E = q_in.shape
    d = E // num_heads
    Q = (q_in @ wq).reshape(B * num_heads, d)
    K = (k_in @ wk).reshape(B * num_heads, d)
    V = (v_in @ wv).reshape(B * num_heads, d)
    S = (Q @ K.T) / math.sqrt(d)
    ctx = (S @ V).reshape(B, E)
    return ctx @ wo


if __name__ == "__main__":
    embed_dim, num_heads, batch = 32, 4, 8

    key = jax.random.PRNGKey(0)
    kq, kk, kv, k1, k2, k3, k4 = jax.random.split(key, 7)
    w_scale = 1.0 / math.sqrt(embed_dim)

    queries = jax.random.normal(kq, (batch, embed_dim), jnp.float32)
    keys_in = jax.random.normal(kk, (batch, embed_dim), jnp.float32)
    values_in = jax.random.normal(kv, (batch, embed_dim), jnp.float32)
    w_q = jax.random.normal(k1, (embed_dim, embed_dim), jnp.float32) * w_scale
    w_k = jax.random.normal(k2, (embed_dim, embed_dim), jnp.float32) * w_scale
    w_v = jax.random.normal(k3, (embed_dim, embed_dim), jnp.float32) * w_scale
    w_o = jax.random.normal(k4, (embed_dim, embed_dim), jnp.float32) * w_scale

    mha = jax.jit(multi_head_attention_forward, static_argnums=(7,))
    out = mha(queries, keys_in, values_in, w_q, w_k, w_v, w_o, num_heads)
    out = jax.block_until_ready(out)

    ref = _reference_mha(queries, keys_in, values_in, w_q, w_k, w_v, w_o,
                         num_heads)

    assert out.shape == (batch, embed_dim)
    max_err = float(jnp.max(jnp.abs(out - ref)))
    assert jnp.allclose(out, ref, atol=2e-2, rtol=2e-2), f"max abs err = {max_err}"

    print("KERNEL_OK")
</pallas_src>

<mosaic_0001>
module attributes {stable_mosaic.version = 11 : i64} {
  func.func @_fused_mha_kernel(%arg0: i32, %arg1: i32, %arg2: memref<8x32xf32, #tpu.memory_space<vmem>>, %arg3: memref<8x32xf32, #tpu.memory_space<vmem>>, %arg4: memref<8x32xf32, #tpu.memory_space<vmem>>, %arg5: memref<32x32xf32, #tpu.memory_space<vmem>>, %arg6: memref<32x32xf32, #tpu.memory_space<vmem>>, %arg7: memref<32x32xf32, #tpu.memory_space<vmem>>, %arg8: memref<32x32xf32, #tpu.memory_space<vmem>>, %arg9: memref<8x32xf32, #tpu.memory_space<vmem>>, %arg10: memref<8x8xf32, #tpu.memory_space<vmem>>) attributes {dimension_semantics = [#tpu.dimension_semantics<arbitrary>, #tpu.dimension_semantics<arbitrary>], iteration_bounds = array<i64: 2, 1>, scalar_prefetch = 0 : i64, scratch_operands = 1 : i64, tpu.core_type = #tpu.core_type<tc>, window_params = [{transform_indices = @transform_0, window_bounds = array<i64: 8, 32>}, {transform_indices = @transform_1, window_bounds = array<i64: 8, 32>}, {transform_indices = @transform_2, window_bounds = array<i64: 8, 32>}, {pipeline_mode = #tpu.pipeline_mode<synchronous>, transform_indices = @transform_3, window_bounds = array<i64: 32, 32>}, {pipeline_mode = #tpu.pipeline_mode<synchronous>, transform_indices = @transform_4, window_bounds = array<i64: 32, 32>}, {pipeline_mode = #tpu.pipeline_mode<synchronous>, transform_indices = @transform_5, window_bounds = array<i64: 32, 32>}, {pipeline_mode = #tpu.pipeline_mode<synchronous>, transform_indices = @transform_6, window_bounds = array<i64: 32, 32>}, {transform_indices = @transform_7, window_bounds = array<i64: 8, 32>}]} {
    %c0_i32 = arith.constant 0 : i32
    %0 = arith.cmpi eq, %arg0, %c0_i32 : i32
    %c0_i32_0 = arith.constant 0 : i32
    %1 = arith.cmpi eq, %arg1, %c0_i32_0 : i32
    %2 = arith.andi %0, %1 : i1
    %3 = arith.extui %2 : i1 to i32
    %c0_i32_1 = arith.constant 0 : i32
    %4 = arith.cmpi ne, %3, %c0_i32_1 : i32
    scf.if %4 {
      %cst = arith.constant 0.000000e+00 : f32
      %11 = vector.broadcast %cst : f32 to vector<8x8xf32>
      %c0 = arith.constant 0 : index
      %c0_5 = arith.constant 0 : index
      %12 = vector.load %arg10[%c0, %c0_5] : memref<8x8xf32, #tpu.memory_space<vmem>>, vector<8x8xf32>
      tpu.vector_store %arg10[%c0, %c0_5], %11 {strides = array<i32>} : memref<8x8xf32, #tpu.memory_space<vmem>>, vector<8x8xf32>,
    } else {
    }
    %c0_i32_2 = arith.constant 0 : i32
    %5 = arith.cmpi eq, %arg0, %c0_i32_2 : i32
    %6 = arith.extui %5 : i1 to i32
    %c0_i32_3 = arith.constant 0 : i32
    %7 = arith.cmpi ne, %6, %c0_i32_3 : i32
    scf.if %7 {
      %c0 = arith.constant 0 : index
      %c0_5 = arith.constant 0 : index
      %11 = vector.load %arg3[%c0, %c0_5] : memref<8x32xf32, #tpu.memory_space<vmem>>, vector<8x32xf32>
      %c0_6 = arith.constant 0 : index
      %c0_7 = arith.constant 0 : index
      %12 = vector.load %arg6[%c0_6, %c0_7] : memref<32x32xf32, #tpu.memory_space<vmem>>, vector<32x32xf32>
      %cst = arith.constant dense<0.000000e+00> : vector<8x32xf32>
      %13 = tpu.matmul %11, %12, %cst {dimension_numbers = #tpu.dot_dimension_numbers<[1], [0], [0], [1], [0, 0, 1, 1], [], []>} : vector<8x32xf32>, vector<32x32xf32>, vector<8x32xf32> -> vector<8x32xf32>
      %c0_8 = arith.constant 0 : index
      %c0_9 = arith.constant 0 : index
      %14 = vector.load %arg4[%c0_8, %c0_9] : memref<8x32xf32, #tpu.memory_space<vmem>>, vector<8x32xf32>
      %c0_10 = arith.constant 0 : index
      %c0_11 = arith.constant 0 : index
      %15 = vector.load %arg7[%c0_10, %c0_11] : memref<32x32xf32, #tpu.memory_space<vmem>>, vector<32x32xf32>
      %cst_12 = arith.constant dense<0.000000e+00> : vector<8x32xf32>
      %16 = tpu.matmul %14, %15, %cst_12 {dimension_numbers = #tpu.dot_dimension_numbers<[1], [0], [0], [1], [0, 0, 1, 1], [], []>} : vector<8x32xf32>, vector<32x32xf32>, vector<8x32xf32> -> vector<8x32xf32>
      %c0_13 = arith.constant 0 : index
      %c0_14 = arith.constant 0 : index
      %17 = vector.load %arg10[%c0_13, %c0_14] : memref<8x8xf32, #tpu.memory_space<vmem>>, vector<8x8xf32>
      %18 = vector.extract_strided_slice %13 {offsets = [0, 0], sizes = [8, 8], strides = [1, 1]} : vector<8x32xf32> to vector<8x8xf32>
      %19 = vector.extract_strided_slice %16 {offsets = [0, 0], sizes = [8, 8], strides = [1, 1]} : vector<8x32xf32> to vector<8x8xf32>
      %cst_15 = arith.constant dense<0.000000e+00> : vector<8x8xf32>
      %20 = tpu.matmul %18, %19, %cst_15 {dimension_numbers = #tpu.dot_dimension_numbers<[0], [0], [1], [1], [0, 1, 1, 1], [], []>} : vector<8x8xf32>, vector<8x8xf32>, vector<8x8xf32> -> vector<8x8xf32>
      %21 = arith.addf %17, %20 : vector<8x8xf32>
      %22 = vector.extract_strided_slice %13 {offsets = [0, 8], sizes = [8, 8], strides = [1, 1]} : vector<8x32xf32> to vector<8x8xf32>
      %23 = vector.extract_strided_slice %16 {offsets = [0, 8], sizes = [8, 8], strides = [1, 1]} : vector<8x32xf32> to vector<8x8xf32>
      %cst_16 = arith.constant dense<0.000000e+00> : vector<8x8xf32>
      %24 = tpu.matmul %22, %23, %cst_16 {dimension_numbers = #tpu.dot_dimension_numbers<[0], [0], [1], [1], [0, 1, 1, 1], [], []>} : vector<8x8xf32>, vector<8x8xf32>, vector<8x8xf32> -> vector<8x8xf32>
      %25 = arith.addf %21, %24 : vector<8x8xf32>
      %26 = vector.extract_strided_slice %13 {offsets = [0, 16], sizes = [8, 8], strides = [1, 1]} : vector<8x32xf32> to vector<8x8xf32>
      %27 = vector.extract_strided_slice %16 {offsets = [0, 16], sizes = [8, 8], strides = [1, 1]} : vector<8x32xf32> to vector<8x8xf32>
      %cst_17 = arith.constant dense<0.000000e+00> : vector<8x8xf32>
      %28 = tpu.matmul %26, %27, %cst_17 {dimension_numbers = #tpu.dot_dimension_numbers<[0], [0], [1], [1], [0, 1, 1, 1], [], []>} : vector<8x8xf32>, vector<8x8xf32>, vector<8x8xf32> -> vector<8x8xf32>
      %29 = arith.addf %25, %28 : vector<8x8xf32>
      %30 = vector.extract_strided_slice %13 {offsets = [0, 24], sizes = [8, 8], strides = [1, 1]} : vector<8x32xf32> to vector<8x8xf32>
      %31 = vector.extract_strided_slice %16 {offsets = [0, 24], sizes = [8, 8], strides = [1, 1]} : vector<8x32xf32> to vector<8x8xf32>
      %cst_18 = arith.constant dense<0.000000e+00> : vector<8x8xf32>
      %32 = tpu.matmul %30, %31, %cst_18 {dimension_numbers = #tpu.dot_dimension_numbers<[0], [0], [1], [1], [0, 1, 1, 1], [], []>} : vector<8x8xf32>, vector<8x8xf32>, vector<8x8xf32> -> vector<8x8xf32>
      %33 = arith.addf %29, %32 : vector<8x8xf32>
      %c0_19 = arith.constant 0 : index
      %c0_20 = arith.constant 0 : index
      %34 = vector.load %arg10[%c0_19, %c0_20] : memref<8x8xf32, #tpu.memory_space<vmem>>, vector<8x8xf32>
      tpu.vector_store %arg10[%c0_19, %c0_20], %33 {strides = array<i32>} : memref<8x8xf32, #tpu.memory_space<vmem>>, vector<8x8xf32>,
    } else {
    }
    %c1_i32 = arith.constant 1 : i32
    %8 = arith.cmpi eq, %arg0, %c1_i32 : i32
    %9 = arith.extui %8 : i1 to i32
    %c0_i32_4 = arith.constant 0 : i32
    %10 = arith.cmpi ne, %9, %c0_i32_4 : i32
    scf.if %10 {
      %c0 = arith.constant 0 : index
      %c0_5 = arith.constant 0 : index
      %11 = vector.load %arg2[%c0, %c0_5] : memref<8x32xf32, #tpu.memory_space<vmem>>, vector<8x32xf32>
      %c0_6 = arith.constant 0 : index
      %c0_7 = arith.constant 0 : index
      %12 = vector.load %arg5[%c0_6, %c0_7] : memref<32x32xf32, #tpu.memory_space<vmem>>, vector<32x32xf32>
      %cst = arith.constant dense<0.000000e+00> : vector<8x32xf32>
      %13 = tpu.matmul %11, %12, %cst {dimension_numbers = #tpu.dot_dimension_numbers<[1], [0], [0], [1], [0, 0, 1, 1], [], []>} : vector<8x32xf32>, vector<32x32xf32>, vector<8x32xf32> -> vector<8x32xf32>
      %c0_8 = arith.constant 0 : index
      %c0_9 = arith.constant 0 : index
      %14 = vector.load %arg8[%c0_8, %c0_9] : memref<32x32xf32, #tpu.memory_space<vmem>>, vector<32x32xf32>
      %c0_10 = arith.constant 0 : index
      %c0_11 = arith.constant 0 : index
      %15 = vector.load %arg10[%c0_10, %c0_11] : memref<8x8xf32, #tpu.memory_space<vmem>>, vector<8x8xf32>
      %cst_12 = arith.constant 0.353553385 : f32
      %16 = vector.broadcast %cst_12 : f32 to vector<8x8xf32>
      %17 = arith.mulf %15, %16 : vector<8x8xf32>
      %cst_13 = arith.constant 0.000000e+00 : f32
      %18 = vector.broadcast %cst_13 : f32 to vector<8x32xf32>
      %19 = vector.extract_strided_slice %14 {offsets = [0, 0], sizes = [8, 32], strides = [1, 1]} : vector<32x32xf32> to vector<8x32xf32>
      %cst_14 = arith.constant dense<0.000000e+00> : vector<8x32xf32>
      %20 = tpu.matmul %17, %19, %cst_14 {dimension_numbers = #tpu.dot_dimension_numbers<[1], [0], [0], [1], [0, 0, 1, 1], [], []>} : vector<8x8xf32>, vector<8x32xf32>, vector<8x32xf32> -> vector<8x32xf32>
      %21 = vector.extract_strided_slice %13 {offsets = [0, 0], sizes = [8, 8], strides = [1, 1]} : vector<8x32xf32> to vector<8x8xf32>
      %cst_15 = arith.constant dense<0.000000e+00> : vector<8x32xf32>
      %22 = tpu.matmul %21, %20, %cst_15 {dimension_numbers = #tpu.dot_dimension_numbers<[1], [0], [0], [1], [0, 0, 1, 1], [], []>} : vector<8x8xf32>, vector<8x32xf32>, vector<8x32xf32> -> vector<8x32xf32>
      %23 = arith.addf %18, %22 : vector<8x32xf32>
      %24 = vector.extract_strided_slice %14 {offsets = [8, 0], sizes = [8, 32], strides = [1, 1]} : vector<32x32xf32> to vector<8x32xf32>
      %cst_16 = arith.constant dense<0.000000e+00> : vector<8x32xf32>
      %25 = tpu.matmul %17, %24, %cst_16 {dimension_numbers = #tpu.dot_dimension_numbers<[1], [0], [0], [1], [0, 0, 1, 1], [], []>} : vector<8x8xf32>, vector<8x32xf32>, vector<8x32xf32> -> vector<8x32xf32>
      %26 = vector.extract_strided_slice %13 {offsets = [0, 8], sizes = [8, 8], strides = [1, 1]} : vector<8x32xf32> to vector<8x8xf32>
      %cst_17 = arith.constant dense<0.000000e+00> : vector<8x32xf32>
      %27 = tpu.matmul %26, %25, %cst_17 {dimension_numbers = #tpu.dot_dimension_numbers<[1], [0], [0], [1], [0, 0, 1, 1], [], []>} : vector<8x8xf32>, vector<8x32xf32>, vector<8x32xf32> -> vector<8x32xf32>
      %28 = arith.addf %23, %27 : vector<8x32xf32>
      %29 = vector.extract_strided_slice %14 {offsets = [16, 0], sizes = [8, 32], strides = [1, 1]} : vector<32x32xf32> to vector<8x32xf32>
      %cst_18 = arith.constant dense<0.000000e+00> : vector<8x32xf32>
      %30 = tpu.matmul %17, %29, %cst_18 {dimension_numbers = #tpu.dot_dimension_numbers<[1], [0], [0], [1], [0, 0, 1, 1], [], []>} : vector<8x8xf32>, vector<8x32xf32>, vector<8x32xf32> -> vector<8x32xf32>
      %31 = vector.extract_strided_slice %13 {offsets = [0, 16], sizes = [8, 8], strides = [1, 1]} : vector<8x32xf32> to vector<8x8xf32>
      %cst_19 = arith.constant dense<0.000000e+00> : vector<8x32xf32>
      %32 = tpu.matmul %31, %30, %cst_19 {dimension_numbers = #tpu.dot_dimension_numbers<[1], [0], [0], [1], [0, 0, 1, 1], [], []>} : vector<8x8xf32>, vector<8x32xf32>, vector<8x32xf32> -> vector<8x32xf32>
      %33 = arith.addf %28, %32 : vector<8x32xf32>
      %34 = vector.extract_strided_slice %14 {offsets = [24, 0], sizes = [8, 32], strides = [1, 1]} : vector<32x32xf32> to vector<8x32xf32>
      %cst_20 = arith.constant dense<0.000000e+00> : vector<8x32xf32>
      %35 = tpu.matmul %17, %34, %cst_20 {dimension_numbers = #tpu.dot_dimension_numbers<[1], [0], [0], [1], [0, 0, 1, 1], [], []>} : vector<8x8xf32>, vector<8x32xf32>, vector<8x32xf32> -> vector<8x32xf32>
      %36 = vector.extract_strided_slice %13 {offsets = [0, 24], sizes = [8, 8], strides = [1, 1]} : vector<8x32xf32> to vector<8x8xf32>
      %cst_21 = arith.constant dense<0.000000e+00> : vector<8x32xf32>
      %37 = tpu.matmul %36, %35, %cst_21 {dimension_numbers = #tpu.dot_dimension_numbers<[1], [0], [0], [1], [0, 0, 1, 1], [], []>} : vector<8x8xf32>, vector<8x32xf32>, vector<8x32xf32> -> vector<8x32xf32>
      %38 = arith.addf %33, %37 : vector<8x32xf32>
      %c0_22 = arith.constant 0 : index
      %c0_23 = arith.constant 0 : index
      %39 = vector.load %arg9[%c0_22, %c0_23] : memref<8x32xf32, #tpu.memory_space<vmem>>, vector<8x32xf32>
      tpu.vector_store %arg9[%c0_22, %c0_23], %38 {strides = array<i32>} : memref<8x32xf32, #tpu.memory_space<vmem>>, vector<8x32xf32>,
    } else {
    }
    return
  }
  func.func @transform_0(%arg0: i32, %arg1: i32) -> (i32, i32) {
    %0 = arith.muli %arg1, %arg0 : i32
    %c0_i32 = arith.constant 0 : i32
    %c0_i32_0 = arith.constant 0 : i32
    return %0, %c0_i32 : i32, i32
  }
  func.func @transform_1(%arg0: i32, %arg1: i32) -> (i32, i32) {
    %c1_i32 = arith.constant 1 : i32
    %0 = arith.subi %c1_i32, %arg0 : i32
    %1 = arith.muli %arg1, %0 : i32
    %c0_i32 = arith.constant 0 : i32
    %c0_i32_0 = arith.constant 0 : i32
    return %1, %c0_i32 : i32, i32
  }
  func.func @transform_2(%arg0: i32, %arg1: i32) -> (i32, i32) {
    %c1_i32 = arith.constant 1 : i32
    %0 = arith.subi %c1_i32, %arg0 : i32
    %1 = arith.muli %arg1, %0 : i32
    %c0_i32 = arith.constant 0 : i32
    %c0_i32_0 = arith.constant 0 : i32
    return %1, %c0_i32 : i32, i32
  }
  func.func @transform_3(%arg0: i32, %arg1: i32) -> (i32, i32) {
    %c0_i32 = arith.constant 0 : i32
    %c0_i32_0 = arith.constant 0 : i32
    %c0_i32_1 = arith.constant 0 : i32
    return %c0_i32, %c0_i32_0 : i32, i32
  }
  func.func @transform_4(%arg0: i32, %arg1: i32) -> (i32, i32) {
    %c0_i32 = arith.constant 0 : i32
    %c0_i32_0 = arith.constant 0 : i32
    %c0_i32_1 = arith.constant 0 : i32
    return %c0_i32, %c0_i32_0 : i32, i32
  }
  func.func @transform_5(%arg0: i32, %arg1: i32) -> (i32, i32) {
    %c0_i32 = arith.constant 0 : i32
    %c0_i32_0 = arith.constant 0 : i32
    %c0_i32_1 = arith.constant 0 : i32
    return %c0_i32, %c0_i32_0 : i32, i32
  }
  func.func @transform_6(%arg0: i32, %arg1: i32) -> (i32, i32) {
    %c0_i32 = arith.constant 0 : i32
    %c0_i32_0 = arith.constant 0 : i32
    %c0_i32_1 = arith.constant 0 : i32
    return %c0_i32, %c0_i32_0 : i32, i32
  }
  func.func @transform_7(%arg0: i32, %arg1: i32) -> (i32, i32) {
    %0 = arith.muli %arg1, %arg0 : i32
    %c0_i32 = arith.constant 0 : i32
    %c0_i32_0 = arith.constant 0 : i32
    return %0, %c0_i32 : i32, i32
  }
}

</mosaic_0001>

<bundles_post_ra>
// kernel: multi_head_attention_forward.1
= control target key start
LH: loop header
LB: loop body
LE: loop exit
PB: predicated region body
PF: predicated region fallthrough
CT: control target
= control target key end

     0   :  { %12 = vsyncpa [#allocation4], 0  ;;  %s2760_s0 = inlined_call_operand.hbm [shape: f32[8,32], index: 0, kind: input, shape index: {}]   ;;  %s2761_s1 = inlined_call_operand.hbm [shape: f32[8,32], index: 1, kind: input, shape index: {}]   ;;  %s2762_s2 = inlined_call_operand.hbm [shape: f32[8,32], index: 2, kind: input, shape index: {}]   ;;  %s2763_s3 = inlined_call_operand.hbm [shape: f32[32,32], index: 3, kind: input, shape index: {}]   ;;  %s2764_s4 = inlined_call_operand.hbm [shape: f32[32,32], index: 4, kind: input, shape index: {}]   ;;  %s2765_s5 = inlined_call_operand.hbm [shape: f32[32,32], index: 5, kind: input, shape index: {}]   ;;  %s2766_s6 = inlined_call_operand.hbm [shape: f32[32,32], index: 6, kind: input, shape index: {}]   ;;  %s2767_s7 = inlined_call_operand.hbm [shape: f32[8,32], index: 7, kind: output, shape index: {}]  }
   0x1   :  { %14 = vsyncpa [#allocation4 + $0x1], 0 }
   0x2   :  { %15 = vsyncpa [#allocation7], 0 }
   0x3   :  { %17 = vsyncpa [#allocation7 + $0x1], 0 }
   0x4   :  { %18 = vsyncpa [#allocation10], 0 }
   0x5   :  { %19 = vsyncpa [#allocation13], 0 }
   0x6   :  { %20 = vsyncpa [#allocation5], 0 }
   0x7   :  { %22 = vsyncpa [#allocation5 + $0x1], 0  ;;  %s2525_s24 = smov 0   ;;  %s2527_s25 = smov 0  }
   0x8   :  { %s2529_s26 = smov 0  }
   0x9 LB: > { %s2541_s27 = sadd.s32 4294967295, %s2462_s26   ;;  %s1919_s28 = sadd.s32 4294967294, %s2462_s26   ;;  %s2462_s26 = sphi %s2529_s26, %s28_s26   ;;  %s2458_s25 = sphi %s2527_s25, %s2773_s25   ;;  %s2454_s24 = sphi %s2525_s24, %s2772_s24  }
   0xa   : > { %s40_s29 = sadd.s32 1, %s2458_s25  ;;  %p1920_p0 = scmp.ge.s32.totalorder %s2462_s26, 1 }
   0xb   : > { %p42_p1 = scmp.ge.s32.totalorder %s40_s29, 2  ;;  %p245_p2 = scmp.lt.s32.totalorder %s2462_s26, 3 }
   0xc   : > { %p2151_p3 = scmp.eq.s32.totalorder %s2541_s27, 0  ;;  %s2464_s8 = smov [#allocation9]  }
   0xd   : > { %s2775_s29 = smov (%p42_p1, %s40_s29), 0  ;;  %p2550_p4 = pnand %p1920_p0, %p245_p2 }
   0xe   : > { %s257_s9 = sshll.u32 %s2464_s8, 4  ;;  %p2155_p8 = scmp.lt.s32.totalorder %s2462_s26, 2  ;;  %s258_s9 = int_to_ptr.vmem [resolvable:$true] %s257_s9 }
   0xf   : > { %p2124_p5 = pneg %p2550_p4  ;;  %s2465_s11 = smov [#allocation12]  }
  0x10   : > { %s283_s12 = sshll.u32 %s2465_s11, 4  ;;  %s2225_s13 = scalar_lea.vmem %s258_s9, 512  ;;  %s284_s12 = int_to_ptr.vmem [resolvable:$true] %s283_s12 }
  0x11   : > { %p2559_p7 = pnand %p2151_p3, %p2124_p5  ;;  %p2226_p10 = scmp.ne.s32.totalorder %s258_s9, %s2225_s13 }
  0x12   : > { %p2233_p13 = scmp.lt.s32.totalorder %s258_s9, %s258_s9  ;;  %p2234_p0 = scmp.lt.s32.totalorder %s2225_s13, %s2225_s13 }
  0x13   : > { %p2216_p9 = pneg %p2559_p7 }
  0x14   : > { %p2235_p1 = por %p2234_p0, %p2233_p13 }
  0x15   : > { %p2228_p11 = pnand %p2226_p10, %p2216_p9 }
  0x17   : > { %p2229_p12 = pneg %p2228_p11 }
  0x19   : > { %p2236_p2 = pnand %p2235_p1, %p2229_p12 }
  0x1b   : > { %2239 = shalt.err (!%p2236_p2)
}
  0x1c   : > { %s2466_s14 = smov 128   ;;  %s2467_s15 = smov 8  }
  0x1d   : > { %2127 = dma.hbm_to_vmem [thread:$0]  (!%p2559_p7), %s2763_s3, 512, %s258_s9, [#allocation10], %s2466_s14, %s2466_s14, %s2467_s15  }
  0x1e   : > { %p2156_p5 = scmp.eq.s32.totalorder %s2462_s26, 0  ;;  %s2251_s18 = scalar_lea.vmem %s284_s12, 512 }
  0x1f   : > { %p2252_p10 = scmp.ne.s32.totalorder %s284_s12, %s2251_s18  ;;  %p2259_p13 = scmp.lt.s32.totalorder %s284_s12, %s284_s12 }
  0x20   : > { %p2260_p0 = scmp.lt.s32.totalorder %s2251_s18, %s2251_s18 }
  0x21   : > { %p2254_p11 = pnand %p2252_p10, %p2216_p9 }
  0x22   : > { %p2261_p1 = por %p2260_p0, %p2259_p13 }
  0x23   : > { %p2255_p12 = pneg %p2254_p11 }
  0x25   : > { %p2262_p2 = pnand %p2261_p1, %p2255_p12 }
  0x27   : > { %2265 = shalt.err (!%p2262_p2)
}
  0x28   : > { %2133 = dma.hbm_to_vmem [thread:$0]  (!%p2559_p7), %s2765_s5, 512, %s284_s12, [#allocation13], %s2466_s14, %s2466_s14, %s2467_s15  }
  0x29   : > { %p2591_p6 = pnand %p2156_p5, %p2155_p8  ;;  %s329_s22 = sand.u32 1, %s2462_s26  }
  0x2a   : > { %s2468_s23 = smov [#allocation6]   ;;  %s2596_s9 = scalar_lea.sflag [#allocation7], %s329_s22 }
  0x2b   : > { %s342_s8 = sshll.u32 %s2468_s23, 4  ;;  %p2268_p10 = pneg %p2591_p6  ;;  %s343_s8 = int_to_ptr.vmem [resolvable:$true] %s342_s8 }
  0x2c   : > { %s2277_s11 = scalar_lea.vmem %s343_s8, 128  ;;  %s2284_s12 = scalar_lea.vmem %s343_s8, 256 }
  0x2d   : > { %p2278_p11 = scmp.ne.s32.totalorder %s343_s8, %s2277_s11  ;;  %p2285_p8 = scmp.lt.s32.totalorder %s343_s8, %s343_s8 }
  0x2e   : > { %p2286_p5 = scmp.lt.s32.totalorder %s2284_s12, %s2277_s11 }
  0x2f   : > { %p2280_p12 = pnand %p2278_p11, %p2268_p10 }
  0x30   : > { %p2287_p0 = por %p2286_p5, %p2285_p8 }
  0x31   : > { %p2281_p13 = pneg %p2280_p12 }
  0x33   : > { %p2288_p1 = pnand %p2287_p0, %p2281_p13 }
  0x35   : > { %2291 = shalt.err (!%p2288_p1)
}
  0x36   : > { %2143 = dma.hbm_to_vmem [thread:$0]  (!%p2591_p6), %s2761_s1, 128, %s343_s8, %s2596_s9  }
  0x37   : > { %s2469_s17 = smov [#allocation11]   ;;  %s2470_s19 = smov [#allocation14]  }
  0x38   : > { %s270_s18 = sshll.u32 %s2469_s17, 4  ;;  %s296_s20 = sshll.u32 %s2470_s19, 4  ;;  %s271_s18 = int_to_ptr.vmem [resolvable:$true] %s270_s18  ;;  %s297_s20 = int_to_ptr.vmem [resolvable:$true] %s296_s20 }
  0x39   : > { %s2303_s22 = scalar_lea.vmem %s271_s18, 512  ;;  %p2311_p13 = scmp.lt.s32.totalorder %s271_s18, %s271_s18 }
  0x3a   : > { %p2304_p2 = scmp.ne.s32.totalorder %s271_s18, %s2303_s22  ;;  %p2312_p8 = scmp.lt.s32.totalorder %s2303_s22, %s2303_s22 }
  0x3c   : > { %p2306_p11 = pnand %p2304_p2, %p2216_p9  ;;  %p2313_p5 = por %p2312_p8, %p2311_p13 }
  0x3e   : > { %p2307_p12 = pneg %p2306_p11 }
  0x40   : > { %p2314_p0 = pnand %p2313_p5, %p2307_p12 }
  0x42   : > { %2317 = shalt.err (!%p2314_p0)
}
  0x43   : > { %2130 = dma.hbm_to_vmem [thread:$0]  (!%p2559_p7), %s2764_s4, 512, %s271_s18, [#allocation10], %s2466_s14, %s2466_s14, %s2467_s15  }
  0x44   : > { %s2329_s11 = scalar_lea.vmem %s297_s20, 512  ;;  %p2337_p13 = scmp.lt.s32.totalorder %s297_s20, %s297_s20 }
  0x45   : > { %p2330_p1 = scmp.ne.s32.totalorder %s297_s20, %s2329_s11  ;;  %p2338_p12 = scmp.lt.s32.totalorder %s2329_s11, %s2329_s11 }
  0x47   : > { %p2332_p2 = pnand %p2330_p1, %p2216_p9  ;;  %p2339_p8 = por %p2338_p12, %p2337_p13 }
  0x49   : > { %p2333_p11 = pneg %p2332_p2 }
  0x4b   : > { %p2340_p5 = pnand %p2339_p8, %p2333_p11 }
  0x4d   : > { %2343 = shalt.err (!%p2340_p5)
}
  0x4e   : > { %2136 = dma.hbm_to_vmem [thread:$0]  (!%p2559_p7), %s2766_s6, 512, %s297_s20, [#allocation13], %s2466_s14, %s2466_s14, %s2467_s15  }
  0x4f   : > { %s2471_s16 = smov [#allocation3]   ;;  %s2472_s18 = smov [#allocation8]  }
  0x50   : > { %s322_s17 = sshll.u32 %s2471_s16, 4  ;;  %s362_s19 = sshll.u32 %s2472_s18, 4  ;;  %s323_s17 = int_to_ptr.vmem [resolvable:$true] %s322_s17  ;;  %s363_s19 = int_to_ptr.vmem [resolvable:$true] %s362_s19 }
  0x51   : > { %s2355_s22 = scalar_lea.vmem %s323_s17, 128  ;;  %s2362_s10 = scalar_lea.vmem %s323_s17, 256 }
  0x52   : > { %p2356_p9 = scmp.ne.s32.totalorder %s323_s17, %s2355_s22  ;;  %p2363_p2 = scmp.lt.s32.totalorder %s323_s17, %s323_s17 }
  0x53   : > { %p2364_p11 = scmp.lt.s32.totalorder %s2362_s10, %s2355_s22 }
  0x54   : > { %p2358_p0 = pnand %p2356_p9, %p2268_p10 }
  0x55   : > { %p2365_p13 = por %p2364_p11, %p2363_p2 }
  0x56   : > { %p2359_p1 = pneg %p2358_p0 }
  0x58   : > { %p2366_p12 = pnand %p2365_p13, %p2359_p1 }
  0x5a   : > { %2369 = shalt.err (!%p2366_p12)
}
  0x5b   : > { %2140 = dma.hbm_to_vmem [thread:$0]  (!%p2591_p6), %s2760_s0, 128, %s323_s17, [#allocation4]  }
  0x5c   : > { %s2381_s20 = scalar_lea.vmem %s363_s19, 128  ;;  %s2388_s23 = scalar_lea.vmem %s363_s19, 256 }
  0x5d   : > { %p2382_p7 = scmp.ne.s32.totalorder %s363_s19, %s2381_s20  ;;  %p2389_p9 = scmp.lt.s32.totalorder %s363_s19, %s363_s19 }
  0x5e   : > { %p2390_p0 = scmp.lt.s32.totalorder %s2388_s23, %s2381_s20 }
  0x5f   : > { %p2384_p8 = pnand %p2382_p7, %p2268_p10 }
  0x60   : > { %p2391_p2 = por %p2390_p0, %p2389_p9 }
  0x61   : > { %p2385_p5 = pneg %p2384_p8 }
  0x63   : > { %p2392_p1 = pnand %p2391_p2, %p2385_p5 }
  0x65   : > { %2395 = shalt.err (!%p2392_p1)
}
  0x66   : > { %2146 = dma.hbm_to_vmem [thread:$0]  (!%p2591_p6), %s2762_s2, 128, %s363_s19, %s2596_s9  }
  0x67   : > { %371 = sbr.rel (%p2550_p4) target bundleno = 1511 (0x5e7), region = 48 }
  0x6c   : > { %2433 = dma.done.wait (%p2151_p3), [#allocation4], 128  }
  0x6d   : > { %2435 = vsyncadd (%p2151_p3), [#allocation4], 4294967168  ;;  %s382_s12 = sand.u32 1, %s2541_s27  }
  0x6e   : > { %s383_s13 = scalar_lea.sflag [#allocation7], %s382_s12 }
  0x6f   : > { %2437 = dma.done.wait (%p2151_p3), %s383_s13, 256  }
  0x70   : > { %2439 = vsyncadd (%p2151_p3), %s383_s13, 4294967040 }
  0x71   : > { %2441 = dma.done.wait (%p2151_p3), [#allocation10], 1024  }
  0x72   : > { %2443 = vsyncadd (%p2151_p3), [#allocation10], 4294966272 }
  0x73   : > { %2445 = dma.done.wait (%p2151_p3), [#allocation13], 1024  }
  0x74   : > { %2447 = vsyncadd (%p2151_p3), [#allocation13], 4294966272  ;;  %p458_p4 = scmp.eq.s32.totalorder %s2454_s24, 0 }
  0x75   : > { %vm464_vm0 = vcmask (%p458_p4), 64512   ;;  %v2473_v0 = vmov (%p458_p4), 0.0  }
  0x76   : > { %463 = sbr.rel (!%p458_p4) target bundleno = 123 (0x7b), region = 80  ;;  %465 = vst.msk [vmem:[#allocation2] sm:$0xff] (%p458_p4), %vm464_vm0, %v2473_v0 }
  0x7b PF: > { %p1938_p6 = scmp.ne.s32.totalorder %s2454_s24, 0 }
  0x7c   : > { %s2476_s30 = smov (!%p1938_p6), 104   ;;  %s2477_s21 = smov (!%p1938_p6), 120  }
  0x7d   : > { %468 = sbr.rel (%p1938_p6) target bundleno = 776 (0x308), region = 84  ;;  %s2478_s9 = smov (!%p1938_p6), 112  }
  0x82   : > { %v473_v1 = vld [vmem:[#allocation11 + $0x18] sm:$0xff]  ;;  %v2474_v2 = vmov 0.0   ;;  %v472_v3 = vld [vmem:[#allocation11 + $0x10] sm:$0xff]  ;;  %vm2475_vm1 = vmmov 0   ;;  %v471_v6 = vld [vmem:[#allocation11 + $0x8] sm:$0xff]  ;;  %vm474_vm2 = vcmask 261120  }
  0x83   : > { %1999 = vmatprep.subr.mxu0 %v2474_v2  ;;  %2007 = vmatprep.mubr.msk.f32.mxu0 %vm2475_vm1, %v2474_v2  ;;  %v552_v4 = vld [vmem:[#allocation12 + $0x18] sm:$0xff]  ;;  %v551_v5 = vld [vmem:[#allocation12 + $0x10] sm:$0xff]  ;;  %v550_v7 = vld [vmem:[#allocation12 + $0x8] sm:$0xff]  ;;  %vm659_vm3 = vcmask 64512  }
  0x84   : > { %2000 = vmatpush3.msra.mxu0 %v473_v1  ;;  %2010 = vmatprep.subr.mxu1 %v2474_v2  ;;  %v470_v8 = vld [vmem:[#allocation11] sm:$0xff]  ;;  %v548_v11 = vld [vmem:[#allocation8] sm:$0xff]  ;;  %v626_v28 = vld [vmem:[#allocation2] sm:$0xff] }
  0x85   : > { %2001 = vmatprep.subr.mxu0 %v2474_v2  ;;  %2011 = vmatpush3.msra.mxu1 %v552_v4  ;;  %v469_v9 = vld [vmem:[#allocation6] sm:$0xff] }
  0x86   : > { %2002 = vmatpush3.msra.mxu0 %v472_v3  ;;  %2012 = vmatprep.subr.mxu1 %v2474_v2  ;;  %v549_v10 = vld [vmem:[#allocation12] sm:$0xff] }
  0x87   : > { %2003 = vmatprep.subr.mxu0 %v2474_v2  ;;  %2013 = vmatpush3.msra.mxu1 %v551_v5 }
  0x88   : > { %2004 = vmatpush3.msra.mxu0 %v471_v6  ;;  %2014 = vmatprep.subr.mxu1 %v2474_v2 }
  0x89   : > { %2005 = vmatprep.subr.mxu0 %v2474_v2  ;;  %2015 = vmatpush3.msra.mxu1 %v550_v7 }
  0x8a   : > { %2006 = vmatpush3.msra.mxu0 %v470_v8  ;;  %2016 = vmatprep.subr.mxu1 %v2474_v2 }
  0x8b   : > { %2008 = vmatmul.mubr.msk.f32.vlgmr.msra.gmra.mxu0 %vm474_vm2, %v469_v9  ;;  %2017 = vmatpush3.msra.mxu1 %v549_v10 }
  0x8c   : > { %2018 = vmatprep.mubr.msk.f32.mxu1 %vm2475_vm1, %v2474_v2  ;;  %2021 = vmatprep.subr.mxu0 %v2474_v2 }
  0x8d   : > { %2019 = vmatmul.mubr.msk.f32.vlgmr.msra.gmra.mxu1 %vm474_vm2, %v548_v11  ;;  %2023 = vmatprep.mubr.msk.f32.mxu0 %vm2475_vm1, %v2474_v2 }
  0x8e   : > { %2026 = vmatprep.subr.mxu1 %v2474_v2  ;;  %2028 = vmatprep.mubr.msk.f32.mxu1 %vm2475_vm1, %v2474_v2 }
 0x14b   : > { %v544_v12 = vpop.f32.mrf.mxu0 }
 0x14c   : > { %960 = vrot.lane.b32.xlu1 %v544_v12, %s2476_s30  ;;  %735 = vrot.lane.b32.xlu0 %v544_v12, %s2477_s21 }
 0x14d   : > { %v2009_v13 = vpop.f32.mrf.mxu0  ;;  %v622_v14 = vpop.f32.mrf.mxu1 }
 0x14e   : > { %2022 = vmatpush3.msra.mxu0 %v622_v14 }
 0x14f   : > { %v2020_v15 = vpop.f32.mrf.mxu1  ;;  %2031 = vmatprep.subr.mxu0 %v2474_v2 }
 0x150   : > { %848 = vrot.lane.b32.xlu0 %v544_v12, %s2478_s9  ;;  %771 = vrot.lane.b32.xlu1 %v622_v14, %s2477_s21 }
 0x154   : > { %883 = vrot.lane.b32.xlu0 %v622_v14, %s2478_s9  ;;  %995 = vrot.lane.b32.xlu1 %v622_v14, %s2476_s30 }
 0x172   : > { %627 = vxpose.xlu0.b32.start.end [1/1] (short) (narrow) %v544_v12, 8 }
 0x1be   : > { %v961_v16 = vpop.permute.xlu1 %960  ;;  %v736_v17 = vpop.permute.xlu0 %735 }
 0x1bf   : > { %738 = vxpose.xlu1.b32.start.end [1/1] (short) (narrow) %v736_v17, 8 }
 0x1c2   : > { %v849_v18 = vpop.permute.xlu0 %848  ;;  %v772_v19 = vpop.permute.xlu1 %771 }
 0x1c3   : > { %851 = vxpose.xlu0.b32.start.end [1/1] (short) (narrow) %v849_v18, 8  ;;  %2027 = vmatpush3.msra.mxu1 %v772_v19 }
 0x1c4   : > { %2036 = vmatprep.subr.mxu1 %v2474_v2 }
 0x1c6   : > { %v884_v20 = vpop.permute.xlu0 %883  ;;  %v996_v22 = vpop.permute.xlu1 %995 }
 0x1c7   : > { %963 = vxpose.xlu0.b32.start.end [1/1] (short) (narrow) %v961_v16, 8 }
 0x1ee   : > { %v643_v21 = vpop.trf.xlu0 }
 0x1ef   : > { %2024 = vmatmul.mubr.msk.f32.vlgmr.msra.gmra.mxu0 %vm659_vm3, %v643_v21 }
 0x1f0   : > { %2032 = vmatpush3.msra.mxu0 %v884_v20  ;;  %2033 = vmatprep.mubr.msk.f32.mxu0 %vm2475_vm1, %v2474_v2 }
 0x23b   : > { %v754_v23 = vpop.trf.xlu1 }
 0x23c   : > { %2029 = vmatmul.mubr.msk.f32.vlgmr.msra.gmra.mxu1 %vm659_vm3, %v754_v23 }
 0x23d   : > { %2037 = vmatpush3.msra.mxu1 %v996_v22  ;;  %2038 = vmatprep.mubr.msk.f32.mxu1 %vm2475_vm1, %v2474_v2 }
 0x23f   : > { %v867_v24 = vpop.trf.xlu0 }
 0x240   : > { %2034 = vmatmul.mubr.msk.f32.vlgmr.msra.gmra.mxu0 %vm659_vm3, %v867_v24 }
 0x243   : > { %v979_v25 = vpop.trf.xlu0 }
 0x244   : > { %2039 = vmatmul.mubr.msk.f32.vlgmr.msra.gmra.mxu1 %vm659_vm3, %v979_v25 }
 0x2af   : > { %v729_v26 = vpop.f32.mrf.mxu0 }
 0x2b0   : > { %v733_v29 = vadd.f32 %v729_v26, %v626_v28 }
 0x2b1   : > { %v2025_v27 = vpop.f32.mrf.mxu0 }
 0x2fc   : > { %v843_v30 = vpop.f32.mrf.mxu1 }
 0x2fd   : > { %v847_v32 = vadd.f32 %v843_v30, %v733_v29 }
 0x2fe   : > { %v2030_v31 = vpop.f32.mrf.mxu1 }
 0x300   : > { %v955_v33 = vpop.f32.mrf.mxu0 }
 0x301   : > { %v959_v35 = vadd.f32 %v955_v33, %v847_v32 }
 0x302   : > { %v2035_v34 = vpop.f32.mrf.mxu0 }
 0x304   : > { %v1067_v36 = vpop.f32.mrf.mxu1 }
 0x305   : > { %v1071_v37 = vadd.f32 %v1067_v36, %v959_v35 }
 0x306   : > { %v2040_v38 = vpop.f32.mrf.mxu1 }
 0x307   : > { %1072 = vst.msk [vmem:[#allocation2] sm:$0xff] %vm659_vm3, %v1071_v37 }
 0x308 PF: > { %p1945_p3 = scmp.ne.s32.totalorder %s2454_s24, 1 }
 0x309   : > { %s2481_s24 = smov (!%p1945_p3), 104   ;;  %s2482_s16 = smov (!%p1945_p3), 120  }
 0x30a   : > { %1076 = sbr.rel (%p1945_p3) target bundleno = 1498 (0x5da), region = 88  ;;  %s2483_s17 = smov (!%p1945_p3), 112  }
 0x30f   : > { %v1081_v39 = vld [vmem:[#allocation9 + $0x18] sm:$0xff]  ;;  %v2479_v40 = vmov 0.0   ;;  %v1080_v41 = vld [vmem:[#allocation9 + $0x10] sm:$0xff]  ;;  %v1156_v42 = vld [vmem:[#allocation14] sm:$0xff]  ;;  %vm1162_vm4 = vcmask 64512   ;;  %vm2480_vm5 = vmmov 0  }
 0x310   : > { %2041 = vmatprep.subr.mxu0 %v2479_v40  ;;  %2052 = vmatprep.subr.mxu1 %v2479_v40  ;;  %v1160_v43 = vld [vmem:[#allocation2] sm:$0xff]  ;;  %v1078_v47 = vld [vmem:[#allocation9] sm:$0xff]  ;;  %v1077_v48 = vld [vmem:[#allocation3] sm:$0xff]  ;;  %vm1082_vm6 = vcmask 261120  }
 0x311   : > { %2042 = vmatpush3.msra.mxu0 %v1081_v39  ;;  %2053 = vmatpush3.msra.mxu1 %v1156_v42  ;;  %v1161_v44 = vmul.f32 0.35355338, %v1160_v43  ;;  %v1079_v45 = vld [vmem:[#allocation9 + $0x8] sm:$0xff]  ;;  %v1158_v55 = vld [vmem:[#allocation14 + $0x10] sm:$0xff]  ;;  %v1159_v57 = vld [vmem:[#allocation14 + $0x18] sm:$0xff] }
 0x312   : > { %2043 = vmatprep.subr.mxu0 %v2479_v40  ;;  %2054 = vmatprep.mubr.msk.f32.mxu1 %vm2480_vm5, %v2479_v40  ;;  %v1157_v46 = vld [vmem:[#allocation14 + $0x8] sm:$0xff] }
 0x313   : > { %2044 = vmatpush3.msra.mxu0 %v1080_v41  ;;  %2049 = vmatprep.mubr.msk.f32.mxu0 %vm2480_vm5, %v2479_v40 }
 0x314   : > { %2045 = vmatprep.subr.mxu0 %v2479_v40  ;;  %2055 = vmatmul.mubr.msk.f32.vlgmr.msra.gmra.mxu1 %vm1162_vm4, %v1161_v44 }
 0x315   : > { %2046 = vmatpush3.msra.mxu0 %v1079_v45  ;;  %2057 = vmatprep.subr.mxu1 %v2479_v40 }
 0x316   : > { %2047 = vmatprep.subr.mxu0 %v2479_v40  ;;  %2058 = vmatpush3.msra.mxu1 %v1157_v46 }
 0x317   : > { %2048 = vmatpush3.msra.mxu0 %v1078_v47  ;;  %2059 = vmatprep.mubr.msk.f32.mxu1 %vm2480_vm5, %v2479_v40 }
 0x318   : > { %2050 = vmatmul.mubr.msk.f32.vlgmr.msra.gmra.mxu0 %vm1082_vm6, %v1077_v48  ;;  %2060 = vmatmul.mubr.msk.f32.vlgmr.msra.gmra.mxu1 %vm1162_vm4, %v1161_v44 }
 0x319   : > { %2067 = vmatprep.subr.mxu0 %v2479_v40  ;;  %2069 = vmatprep.mubr.msk.f32.mxu0 %vm2480_vm5, %v2479_v40 }
 0x31a   : > { %2062 = vmatprep.subr.mxu1 %v2479_v40  ;;  %2064 = vmatprep.mubr.msk.f32.mxu1 %vm2480_vm5, %v2479_v40 }
 0x3d4   : > { %v1232_v49 = vpop.f32.mrf.mxu1 }
 0x3d5   : > { %2068 = vmatpush3.msra.mxu0 %v1232_v49 }
 0x3d6   : > { %v2056_v50 = vpop.f32.mrf.mxu1  ;;  %2077 = vmatprep.subr.mxu0 %v2479_v40 }
 0x3d8   : > { %v1152_v51 = vpop.f32.mrf.mxu0  ;;  %v1302_v52 = vpop.f32.mrf.mxu1 }
 0x3d9   : > { %1668 = vrot.lane.b32.xlu1 %v1152_v51, %s2481_s24  ;;  %1307 = vrot.lane.b32.xlu0 %v1152_v51, %s2482_s16 }
 0x3da   : > { %2070 = vmatmul.mubr.msk.f32.vlgmr.msra.gmra.mxu0 %vm1162_vm4, %v1152_v51  ;;  %v2051_v53 = vpop.f32.mrf.mxu0  ;;  %v2061_v54 = vpop.f32.mrf.mxu1  ;;  %2063 = vmatpush3.msra.mxu1 %v1302_v52 }
 0x3db   : > { %2072 = vmatprep.subr.mxu1 %v2479_v40  ;;  %2079 = vmatprep.mubr.msk.f32.mxu0 %vm2480_vm5, %v2479_v40 }
 0x3dd   : > { %1523 = vrot.lane.b32.xlu0 %v1152_v51, %s2483_s17 }
 0x44b   : > { %v1308_v56 = vpop.permute.xlu0 %1307  ;;  %v1669_v2 = vpop.permute.xlu1 %1668 }
 0x44c   : > { %2065 = vmatmul.mubr.msk.f32.vlgmr.msra.gmra.mxu1 %vm1162_vm4, %v1308_v56 }
 0x44d   : > { %2073 = vmatpush3.msra.mxu1 %v1158_v55  ;;  %2074 = vmatprep.mubr.msk.f32.mxu1 %vm2480_vm5, %v2479_v40 }
 0x44e   : > { %2082 = vmatprep.subr.mxu1 %v2479_v40 }
 0x44f   : > { %v1524_v63 = vpop.permute.xlu0 %1523 }
 0x450   : > { %2075 = vmatmul.mubr.msk.f32.vlgmr.msra.gmra.mxu1 %vm1162_vm4, %v1161_v44 }
 0x451   : > { %2083 = vmatpush3.msra.mxu1 %v1159_v57  ;;  %2084 = vmatprep.mubr.msk.f32.mxu1 %vm2480_vm5, %v2479_v40 }
 0x454   : > { %2085 = vmatmul.mubr.msk.f32.vlgmr.msra.gmra.mxu1 %vm1162_vm4, %v1161_v44 }
 0x49a   : > { %v1449_v58 = vpop.f32.mrf.mxu0 }
 0x49c   : > { %v2071_v59 = vpop.f32.mrf.mxu0 }
 0x50c   : > { %v1377_v60 = vpop.f32.mrf.mxu1 }
 0x50d   : > { %v1450_v5 = vadd.f32 %v1449_v58, %v1377_v60 }
 0x50e   : > { %v2066_v61 = vpop.f32.mrf.mxu1 }
 0x510   : > { %v1519_v62 = vpop.f32.mrf.mxu1 }
 0x511   : > { %2078 = vmatpush3.msra.mxu0 %v1519_v62 }
 0x512   : > { %v2076_v0 = vpop.f32.mrf.mxu1  ;;  %2080 = vmatmul.mubr.msk.f32.vlgmr.msra.gmra.mxu0 %vm1162_vm4, %v1524_v63  ;;  %2087 = vmatprep.subr.mxu0 %v2479_v40 }
 0x513   : > { %2089 = vmatprep.mubr.msk.f32.mxu0 %vm2480_vm5, %v2479_v40 }
 0x514   : > { %v1664_v1 = vpop.f32.mrf.mxu1 }
 0x515   : > { %2088 = vmatpush3.msra.mxu0 %v1664_v1 }
 0x516   : > { %v2086_v3 = vpop.f32.mrf.mxu1  ;;  %2090 = vmatmul.mubr.msk.f32.vlgmr.msra.gmra.mxu0 %vm1162_vm4, %v1669_v2 }
 0x5d2   : > { %v1593_v4 = vpop.f32.mrf.mxu0 }
 0x5d3   : > { %v1597_v7 = vadd.f32 %v1593_v4, %v1450_v5 }
 0x5d4   : > { %v2081_v6 = vpop.f32.mrf.mxu0 }
 0x5d6   : > { %v1738_v8 = vpop.f32.mrf.mxu0 }
 0x5d7   : > { %v1742_v9 = vadd.f32 %v1738_v8, %v1597_v7 }
 0x5d8   : > { %v2091_v10 = vpop.f32.mrf.mxu0 }
 0x5d9   : > { %1743 = vst.msk [vmem:[#allocation15] sm:$0xff] %vm1082_vm6, %v1742_v9 }
 0x5da PF: > { %p2166_p10 = scmp.eq.s32.totalorder %s2541_s27, 1  ;;  %s2484_s18 = smov [#allocation15]  }
 0x5db   : > { %s1759_s19 = sshll.u32 %s2484_s18, 4  ;;  %s1760_s19 = int_to_ptr.vmem [resolvable:$true] %s1759_s19 }
 0x5dc   : > { %s2396_s22 = scalar_lea.vmem %s1760_s19, 128  ;;  %s2402_s10 = scalar_lea.vmem %s1760_s19, 256 }
 0x5dd   : > { %p2397_p11 = scmp.ne.s32.totalorder %s1760_s19, %s2396_s22  ;;  %p2403_p7 = scmp.lt.s32.totalorder %s1760_s19, %s1760_s19 }
 0x5de   : > { %p2404_p8 = scmp.lt.s32.totalorder %s2402_s10, %s2396_s22 }
 0x5df   : > { %p2398_p13 = pnand %p2397_p11, %p2166_p10 }
 0x5e0   : > { %p2405_p5 = por %p2404_p8, %p2403_p7 }
 0x5e1   : > { %p2399_p12 = pneg %p2398_p13 }
 0x5e3   : > { %p2406_p9 = pnand %p2405_p5, %p2399_p12 }
 0x5e5   : > { %2409 = shalt.err (!%p2406_p9)
}
 0x5e6   : > { %2121 = dma.vmem_to_hbm [thread:$0]  (%p2166_p10), %s1760_s19, 128, %s2767_s7, [#allocation5]  }
 0x5e7 PF: > { %p2168_p0 = scmp.eq.s32.totalorder %s1919_s28, 1  ;;  %p2771_p2 = scmp.ge.s32.totalorder %s2462_s26, 2 }
 0x5e9   : > { %p2148_p1 = pnand %p2168_p0, %p2771_p2 }
 0x5eb   : > { %p2149_p4 = pneg %p2148_p1 }
 0x5ed   : > { %2449 = dma.done.wait (%p2149_p4), [#allocation5], 128  }
 0x5ee   : > { %2451 = vsyncadd (%p2149_p4), [#allocation5], 4294967168  ;;  %s28_s26 = sadd.s32 1, %s2462_s26   ;;  %s2772_s24 = smov %s2458_s25 }
 0x5ef   : > { %p25_p6 = scmp.ge.s32.totalorder %s28_s26, 4   ;;  %s2773_s25 = smov %s2775_s29 }
 0x5f1   :  { %27 = sbr.rel (!%p25_p6) target bundleno = 9 (0x9), region = 145 }
 0x5f6   :  { %1777 = vsyncpa [#allocation4], 1 }
 0x5f7   :  { %1779 = vsyncpa [#allocation4 + $0x1], 1 }
 0x5f8   :  { %1780 = vsyncpa [#allocation7], 1 }
 0x5f9   :  { %1782 = vsyncpa [#allocation7 + $0x1], 1 }
 0x5fa   :  { %1783 = vsyncpa [#allocation10], 1 }
 0x5fb   :  { %1784 = vsyncpa [#allocation13], 1 }
 0x5fc   :  { %1785 = vsyncpa [#allocation5], 1 }
 0x5fd   :  { %1787 = vsyncpa [#allocation5 + $0x1], 1 }

</bundles_post_ra>
